<compile_context>
chip_gen: v7x
topology: tpu7x:2x2x1
jax: 0.10.0
libtpu: 0.0.40
codegen_flags: <defaults>
</compile_context>

<pallas_src>
import jax
import jax.numpy as jnp
from jax.experimental import pallas as pl
from jax.experimental.pallas import tpu as pltpu


def _round_up(x, m):
    return (x + m - 1) // m * m


def _tpu_generation():
    try:
        kind = jax.devices()[0].device_kind.lower()
    except Exception:
        return "other"
    if "v5 lite" in kind or "v5e" in kind or "v5lite" in kind:
        return "v5e"
    if "v6" in kind:
        return "v6e"
    if "v7" in kind or "tpu7" in kind:
        return "v7x"
    return "other"


def _vmem_capacity_bytes(gen):
    cap = None
    try:
        cap = int(pltpu.get_tpu_info().vmem_capacity_bytes)
    except Exception:
        cap = None
    if cap is None:
        cap = (128 << 20) if gen in ("v5e", "v6e") else (64 << 20)
    if gen == "v7x":
        cap = min(cap, 64 << 20)  # 64 MiB per TensorCore on v7x
    return cap


def _default_tiles(gen):
    # (tm_max, ti): row tile and intermediate-dim chunk.
    if gen == "v5e":
        return 256, 512   # roofline knee ~240 FLOPs/byte -> tm=256 is enough
    if gen == "v7x":
        return 512, 256   # only 64 MiB VMEM: bigger rows, smaller I chunks
    return 512, 512       # v6e / default: knee ~650 FLOPs/byte


def _bspec(shape, index_map, buffers=None):
    """BlockSpec with optional multi-buffering; falls back if unsupported."""
    if buffers is None:
        return pl.BlockSpec(shape, index_map)
    try:
        return pl.BlockSpec(shape, index_map, pipeline_mode=pl.Buffered(buffers))
    except Exception:
        return pl.BlockSpec(shape, index_map)


def _mlp_kernel(x_ref, wgu_ref, wd_ref, o_ref, acc_ref):
    # x_ref  : (tm, Hp)      activation row tile (constant along k)
    # wgu_ref: (Hp, 2*ti)    fused [gate | up] weight chunk for this k step
    # wd_ref : (ti, Hp)      down_proj weight chunk for this k step
    # o_ref  : (tm, Hp)      output row tile (resident across the k reduction)
    # acc_ref: (tm, Hp) f32  accumulator scratch
    k = pl.program_id(1)

    @pl.when(k == 0)
    def _():
        acc_ref[...] = jnp.zeros_like(acc_ref)

    x = x_ref[...]
    # Single MXU stream for gate+up: one (tm, Hp) x (Hp, 2*ti) matmul.
    gu = jnp.dot(x, wgu_ref[...], preferred_element_type=jnp.float32)
    ti = gu.shape[1] // 2
    g = gu[:, :ti]          # static, lane-aligned slices of a VMEM value
    u = gu[:, ti:]
    # SiLU epilogue in f32 (EUP/VPU work hides under the MXU stream).
    h = (g * jax.nn.sigmoid(g)) * u
    # Partial down-projection, accumulated across intermediate chunks.
    acc_ref[...] += jnp.dot(h.astype(wd_ref.dtype), wd_ref[...],
                            preferred_element_type=jnp.float32)

    @pl.when(k == pl.num_programs(1) - 1)
    def _():
        o_ref[...] = acc_ref[...].astype(o_ref.dtype)


def make_mlp(wg_t, wu_t, wd_t, *, compute_dtype=jnp.bfloat16, out_dtype=None,
             tm=None, ti=None):
    """Build a fused SwiGLU MLP: x -> down( silu(x @ Wg) * (x @ Wu) ).

    Weights are in x @ W form: wg_t/wu_t: (H, I), wd_t: (I, H).
    Padding / casting / gate-up fusion happens ONCE here (model init),
    not on every forward. Returns apply(x) with x: (..., H).
    """
    H, I = wg_t.shape
    assert wu_t.shape == (H, I) and wd_t.shape == (I, H)

    gen = _tpu_generation()
    vmem_cap = _vmem_capacity_bytes(gen)
    vmem_budget = max(16 << 20, vmem_cap - (8 << 20))   # ~8 MiB headroom

    tm_default, ti_default = _default_tiles(gen)
    tm_max = max(128, _round_up(int(tm or tm_default), 128))
    ti_sel = max(128, min(_round_up(int(ti or ti_default), 128),
                          _round_up(I, 128)))

    cd = jnp.dtype(compute_dtype)
    Hp = _round_up(H, 128)

    # Double-buffered tile footprint (inputs + output) + f32 accumulator.
    def est_vmem(tm_, ti_, out_bytes=4):
        nb = cd.itemsize
        return (2 * (tm_ * Hp + Hp * 2 * ti_ + ti_ * Hp) * nb
                + 2 * tm_ * Hp * out_bytes
                + tm_ * Hp * 4)

    # Shrink the intermediate chunk first, then the row tile, until it fits.
    while est_vmem(tm_max, ti_sel) > vmem_budget and ti_sel > 128:
        ti_sel = max(128, ti_sel // 2)
    while est_vmem(tm_max, ti_sel) > vmem_budget and tm_max > 128:
        tm_max = max(128, tm_max // 2)

    Ip = _round_up(I, ti_sel)
    ng = Ip // ti_sel

    def pad2d(w, rows, cols):
        w = jnp.asarray(w).astype(cd)
        r, c = w.shape
        if r == rows and c == cols:      # skip padding when already aligned
            return w
        return jnp.zeros((rows, cols), cd).at[:r, :c].set(w)

    wg_p = pad2d(wg_t, Hp, Ip)
    wu_p = pad2d(wu_t, Hp, Ip)
    wd_p = pad2d(wd_t, Ip, Hp)

    # Fuse gate/up, interleaved at ti granularity so a single (Hp, 2*ti) block
    # per k step carries both: halves weight DMA descriptors and MXU pushes.
    wgu = jnp.concatenate(
        [wg_p.reshape(Hp, ng, ti_sel), wu_p.reshape(Hp, ng, ti_sel)], axis=2
    ).reshape(Hp, 2 * Ip)
    wgu = jax.block_until_ready(wgu)     # materialize once, at init
    wd_p = jax.block_until_ready(wd_p)

    def apply(x):
        od = jnp.dtype(out_dtype) if out_dtype is not None else jnp.dtype(x.dtype)
        orig_shape = x.shape
        x2d = x.reshape(-1, H)
        M = x2d.shape[0]

        tm_ = min(tm_max, _round_up(M, 128))
        # v7x: keep both TensorCores busy -> >= 2 blocks on the parallel axis.
        if gen == "v7x" and M > 128 and _round_up(M, tm_) // tm_ < 2:
            tm_ = _round_up((M + 1) // 2, 128)
        # TODO(synk): for v7x decode with M <= 128, additionally tile the Hp
        # output axis so the second TensorCore still gets work.
        Mp = _round_up(M, tm_)

        x2d = x2d.astype(cd)
        if Mp != M or Hp != H:
            xp = jnp.zeros((Mp, Hp), cd).at[:M, :H].set(x2d)
        else:
            xp = x2d

        num_m = Mp // tm_
        num_k = Ip // ti_sel
        grid = (num_m, num_k)

        # Deeper weight buffering only where the kernel is HBM-bound
        # (small row tile) and there are enough k steps to profit (v6e has
        # the 128 MiB VMEM headroom for it).
        wbuf = 3 if (gen == "v6e" and tm_ <= 256 and num_k >= 3) else None
        # x's block index is constant along k; on v7x free the second buffer.
        xbuf = 1 if gen == "v7x" else None

        ob = od.itemsize
        vmem_limit = int(min(vmem_budget,
                             max(32 << 20,
                                 est_vmem(tm_, ti_sel, ob) + (4 << 20))))

        weight_bytes = (wgu.size + wd_p.size) * cd.itemsize
        cost = pl.CostEstimate(
            flops=6 * Mp * Hp * Ip,
            transcendentals=Mp * Ip,
            # Weights are re-streamed from HBM for every row tile.
            bytes_accessed=(xp.size * cd.itemsize
                            + num_m * weight_bytes
                            + Mp * Hp * ob),
        )

        out = pl.pallas_call(
            _mlp_kernel,
            out_shape=jax.ShapeDtypeStruct((Mp, Hp), od),
            grid_spec=pltpu.PrefetchScalarGridSpec(
                num_scalar_prefetch=0,
                grid=grid,
                in_specs=[
                    _bspec((tm_, Hp), lambda i, k: (i, 0), xbuf),          # x rows
                    _bspec((Hp, 2 * ti_sel), lambda i, k: (0, k), wbuf),   # [Wg|Wu]
                    _bspec((ti_sel, Hp), lambda i, k: (k, 0), wbuf),       # Wd
                ],
                out_specs=pl.BlockSpec((tm_, Hp), lambda i, k: (i, 0)),
                scratch_shapes=[pltpu.VMEM((tm_, Hp), jnp.float32)],
            ),
            compiler_params=pltpu.CompilerParams(
                dimension_semantics=("parallel", "arbitrary"),
                vmem_limit_bytes=vmem_limit,
            ),
            cost_estimate=cost,
        )(xp, wgu, wd_p)

        if Mp != M or Hp != H:
            out = out[:M, :H]
        return out.reshape(orig_shape).astype(od)

    return apply


def mlp_reference(x2d, wg_t, wu_t, wd_t):
    g = x2d @ wg_t
    u = x2d @ wu_t
    return (jax.nn.silu(g) * u) @ wd_t


if __name__ == "__main__":
    # Small config consistent with the module: hidden_size=32, intermediate_size=64.
    batch, seq, hidden, inter = 2, 8, 32, 64

    key = jax.random.PRNGKey(0)
    kx, kg, ku, kd = jax.random.split(key, 4)

    x = jax.random.normal(kx, (batch, seq, hidden), dtype=jnp.float32)

    # torch.nn.Linear weight shape is (out, in); transpose to x @ W form.
    wg = jax.random.normal(kg, (inter, hidden), dtype=jnp.float32) * 0.05
    wu = jax.random.normal(ku, (inter, hidden), dtype=jnp.float32) * 0.05
    wd = jax.random.normal(kd, (hidden, inter), dtype=jnp.float32) * 0.05
    wg_t, wu_t, wd_t = wg.T, wu.T, wd.T

    ref = mlp_reference(x.reshape(-1, hidden), wg_t, wu_t, wd_t).reshape(x.shape)

    # f32 compute path: tight check of kernel math / tiling / padding / fusion.
    mlp_f32 = make_mlp(wg_t, wu_t, wd_t, compute_dtype=jnp.float32)
    out_f32 = mlp_f32(x)
    jax.block_until_ready(out_f32)
    assert out_f32.shape == x.shape
    assert jnp.allclose(out_f32, ref, atol=1e-5, rtol=1e-5), "f32 mismatch vs reference"

    # bf16 compute path (the performance configuration): looser tolerance.
    mlp_bf16 = make_mlp(wg_t, wu_t, wd_t, compute_dtype=jnp.bfloat16)
    out_bf16 = mlp_bf16(x)
    jax.block_until_ready(out_bf16)
    assert out_bf16.shape == x.shape
    assert jnp.allclose(out_bf16, ref, atol=3e-2, rtol=3e-2), "bf16 mismatch vs reference"

    print("KERNEL_OK")
</pallas_src>

<mosaic_0001>
module attributes {stable_mosaic.version = 11 : i64} {
  func.func @_mlp_kernel(%arg0: i32, %arg1: i32, %arg2: memref<128x128xf32, #tpu.memory_space<vmem>>, %arg3: memref<128x256xf32, #tpu.memory_space<vmem>>, %arg4: memref<128x128xf32, #tpu.memory_space<vmem>>, %arg5: memref<128x128xf32, #tpu.memory_space<vmem>>, %arg6: memref<128x128xf32, #tpu.memory_space<vmem>>) attributes {dimension_semantics = [#tpu.dimension_semantics<parallel>, #tpu.dimension_semantics<arbitrary>], iteration_bounds = array<i64: 1, 1>, scalar_prefetch = 0 : i64, scratch_operands = 1 : i64, tpu.core_type = #tpu.core_type<tc>, window_params = [{transform_indices = @transform_0, window_bounds = array<i64: 128, 128>}, {transform_indices = @transform_1, window_bounds = array<i64: 128, 256>}, {transform_indices = @transform_2, window_bounds = array<i64: 128, 128>}, {transform_indices = @transform_3, window_bounds = array<i64: 128, 128>}]} {
    %c0_i32 = arith.constant 0 : i32
    %0 = arith.cmpi eq, %arg1, %c0_i32 : i32
    %1 = arith.extui %0 : i1 to i32
    %c0_i32_0 = arith.constant 0 : i32
    %2 = arith.cmpi ne, %1, %c0_i32_0 : i32
    scf.if %2 {
      %cst_14 = arith.constant 0.000000e+00 : f32
      %23 = vector.broadcast %cst_14 : f32 to vector<128x128xf32>
      %c0_15 = arith.constant 0 : index
      %c0_16 = arith.constant 0 : index
      %24 = vector.load %arg6[%c0_15, %c0_16] : memref<128x128xf32, #tpu.memory_space<vmem>>, vector<128x128xf32>
      tpu.vector_store %arg6[%c0_15, %c0_16], %23 {strides = array<i32>} : memref<128x128xf32, #tpu.memory_space<vmem>>, vector<128x128xf32>,
    } else {
    }
    %c0 = arith.constant 0 : index
    %c0_1 = arith.constant 0 : index
    %3 = vector.load %arg2[%c0, %c0_1] : memref<128x128xf32, #tpu.memory_space<vmem>>, vector<128x128xf32>
    %c0_2 = arith.constant 0 : index
    %c0_3 = arith.constant 0 : index
    %4 = vector.load %arg3[%c0_2, %c0_3] : memref<128x256xf32, #tpu.memory_space<vmem>>, vector<128x256xf32>
    %cst = arith.constant dense<0.000000e+00> : vector<128x256xf32>
    %5 = tpu.matmul %3, %4, %cst {dimension_numbers = #tpu.dot_dimension_numbers<[1], [0], [0], [1], [0, 0, 1, 1], [], []>} : vector<128x128xf32>, vector<128x256xf32>, vector<128x256xf32> -> vector<128x256xf32>
    %6 = vector.extract_strided_slice %5 {offsets = [0, 0], sizes = [128, 128], strides = [1, 1]} : vector<128x256xf32> to vector<128x128xf32>
    %7 = vector.extract_strided_slice %5 {offsets = [0, 128], sizes = [128, 128], strides = [1, 1]} : vector<128x256xf32> to vector<128x128xf32>
    %8 = arith.negf %6 : vector<128x128xf32>
    %9 = math.exp %8 : vector<128x128xf32>
    %cst_4 = arith.constant 1.000000e+00 : f32
    %10 = vector.broadcast %cst_4 : f32 to vector<128x128xf32>
    %11 = arith.addf %10, %9 : vector<128x128xf32>
    %12 = arith.divf %10, %11 : vector<128x128xf32>
    %13 = arith.mulf %6, %12 : vector<128x128xf32>
    %14 = arith.mulf %13, %7 : vector<128x128xf32>
    %c0_5 = arith.constant 0 : index
    %c0_6 = arith.constant 0 : index
    %15 = vector.load %arg6[%c0_5, %c0_6] : memref<128x128xf32, #tpu.memory_space<vmem>>, vector<128x128xf32>
    %c0_7 = arith.constant 0 : index
    %c0_8 = arith.constant 0 : index
    %16 = vector.load %arg4[%c0_7, %c0_8] : memref<128x128xf32, #tpu.memory_space<vmem>>, vector<128x128xf32>
    %cst_9 = arith.constant dense<0.000000e+00> : vector<128x128xf32>
    %17 = tpu.matmul %14, %16, %cst_9 {dimension_numbers = #tpu.dot_dimension_numbers<[1], [0], [0], [1], [0, 0, 1, 1], [], []>} : vector<128x128xf32>, vector<128x128xf32>, vector<128x128xf32> -> vector<128x128xf32>
    %18 = arith.addf %15, %17 : vector<128x128xf32>
    %c0_10 = arith.constant 0 : index
    %c0_11 = arith.constant 0 : index
    %19 = vector.load %arg6[%c0_10, %c0_11] : memref<128x128xf32, #tpu.memory_space<vmem>>, vector<128x128xf32>
    tpu.vector_store %arg6[%c0_10, %c0_11], %18 {strides = array<i32>} : memref<128x128xf32, #tpu.memory_space<vmem>>, vector<128x128xf32>,
    %c0_i32_12 = arith.constant 0 : i32
    %20 = arith.cmpi eq, %arg1, %c0_i32_12 : i32
    %21 = arith.extui %20 : i1 to i32
    %c0_i32_13 = arith.constant 0 : i32
    %22 = arith.cmpi ne, %21, %c0_i32_13 : i32
    scf.if %22 {
      %c0_14 = arith.constant 0 : index
      %c0_15 = arith.constant 0 : index
      %23 = vector.load %arg6[%c0_14, %c0_15] : memref<128x128xf32, #tpu.memory_space<vmem>>, vector<128x128xf32>
      %c0_16 = arith.constant 0 : index
      %c0_17 = arith.constant 0 : index
      %24 = vector.load %arg5[%c0_16, %c0_17] : memref<128x128xf32, #tpu.memory_space<vmem>>, vector<128x128xf32>
      tpu.vector_store %arg5[%c0_16, %c0_17], %23 {strides = array<i32>} : memref<128x128xf32, #tpu.memory_space<vmem>>, vector<128x128xf32>,
    } else {
    }
    return
  }
  func.func @transform_0(%arg0: i32, %arg1: i32) -> (i32, i32) {
    %c0_i32 = arith.constant 0 : i32
    %c0_i32_0 = arith.constant 0 : i32
    return %arg0, %c0_i32 : i32, i32
  }
  func.func @transform_1(%arg0: i32, %arg1: i32) -> (i32, i32) {
    %c0_i32 = arith.constant 0 : i32
    %c0_i32_0 = arith.constant 0 : i32
    return %c0_i32, %arg1 : i32, i32
  }
  func.func @transform_2(%arg0: i32, %arg1: i32) -> (i32, i32) {
    %c0_i32 = arith.constant 0 : i32
    %c0_i32_0 = arith.constant 0 : i32
    return %arg1, %c0_i32 : i32, i32
  }
  func.func @transform_3(%arg0: i32, %arg1: i32) -> (i32, i32) {
    %c0_i32 = arith.constant 0 : i32
    %c0_i32_0 = arith.constant 0 : i32
    return %arg0, %c0_i32 : i32, i32
  }
}

</mosaic_0001>

<bundles_post_ra>
// kernel: tpu_custom_call.1
= control target key start
LH: loop header
LB: loop body
LE: loop exit
PB: predicated region body
PF: predicated region fallthrough
CT: control target
= control target key end

     0   :  { %8 = vsyncpa [#allocation4], 0  ;;  %s1168_s0 = inlined_call_operand.hbm [shape: f32[128,128], index: 0, kind: input, shape index: {}]   ;;  %s1169_s1 = inlined_call_operand.hbm [shape: f32[128,256], index: 1, kind: input, shape index: {}]   ;;  %s1170_s2 = inlined_call_operand.hbm [shape: f32[128,128], index: 2, kind: input, shape index: {}]   ;;  %s1171_s3 = inlined_call_operand.hbm [shape: f32[128,128], index: 3, kind: output, shape index: {}]  }
   0x1   :  { %9 = vsyncpa [#allocation7], 0 }
   0x2   :  { %10 = vsyncpa [#allocation5], 0  ;;  %s1010_s12 = smov [#allocation6]   ;;  %s916_s16 = scalar_lea.hbm %s1169_s1, 4096 }
   0x3   :  { %s28_s13 = sshll.u32 %s1010_s12, 4  ;;  %p917_p0 = scmp.ne.s32.totalorder %s1169_s1, %s916_s16  ;;  %s29_s13 = int_to_ptr.vmem [resolvable:$true] %s28_s13 }
   0x4   :  { %p920_p1 = scmp.lt.u32.totalorder %s916_s16, %s1169_s1 }
   0x6   :  { %p922_p2 = pnand %p920_p1, %p917_p0 }
   0x8   :  { %925 = shalt.err (!%p922_p2)
}
   0x9   :  { %s926_s21 = scalar_lea.vmem %s29_s13, 4096  ;;  %p931_p4 = scmp.lt.s32.totalorder %s29_s13, %s29_s13 }
   0xa   :  { %p927_p3 = scmp.ne.s32.totalorder %s29_s13, %s926_s21  ;;  %p932_p5 = scmp.lt.s32.totalorder %s926_s21, %s926_s21 }
   0xc   :  { %p933_p6 = por %p932_p5, %p931_p4 }
   0xe   :  { %p934_p7 = pnand %p933_p6, %p927_p3 }
  0x10   :  { %937 = shalt.err (!%p934_p7)
}
  0x11   :  { %s1011_s22 = smov 256   ;;  %s1012_s23 = smov 16  }
  0x12   :  { %34 = dma.hbm_to_vmem [thread:$0]  %s1169_s1, 4096, %s29_s13, [#allocation7], %s1011_s22, %s1011_s22, %s1012_s23  }
  0x13   :  { %s1013_s26 = smov [#allocation3]   ;;  %s938_s30 = scalar_lea.hbm %s1168_s0, 2048 }
  0x14   :  { %s16_s27 = sshll.u32 %s1013_s26, 4  ;;  %p939_p8 = scmp.ne.s32.totalorder %s1168_s0, %s938_s30  ;;  %s17_s27 = int_to_ptr.vmem [resolvable:$true] %s16_s27 }
  0x15   :  { %p942_p9 = scmp.lt.u32.totalorder %s938_s30, %s1168_s0 }
  0x17   :  { %p944_p10 = pnand %p942_p9, %p939_p8 }
  0x19   :  { %947 = shalt.err (!%p944_p10)
}
  0x1a   :  { %s948_s8 = scalar_lea.vmem %s17_s27, 2048  ;;  %p953_p12 = scmp.lt.s32.totalorder %s17_s27, %s17_s27 }
  0x1b   :  { %p949_p11 = scmp.ne.s32.totalorder %s17_s27, %s948_s8  ;;  %p954_p13 = scmp.lt.s32.totalorder %s948_s8, %s948_s8 }
  0x1d   :  { %p955_p0 = por %p954_p13, %p953_p12 }
  0x1f   :  { %p956_p1 = pnand %p955_p0, %p949_p11 }
  0x21   :  { %959 = shalt.err (!%p956_p1)
}
  0x22   :  { %s1014_s1 = smov 128   ;;  %s1015_s9 = smov 8  }
  0x23   :  { %22 = dma.hbm_to_vmem [thread:$0]  %s1168_s0, 2048, %s17_s27, [#allocation4], %s1014_s1, %s1014_s1, %s1015_s9  }
  0x24   :  { %s1016_s12 = smov [#allocation8]   ;;  %s960_s16 = scalar_lea.hbm %s1170_s2, 2048 }
  0x25   :  { %s40_s13 = sshll.u32 %s1016_s12, 4  ;;  %p961_p2 = scmp.ne.s32.totalorder %s1170_s2, %s960_s16  ;;  %s41_s13 = int_to_ptr.vmem [resolvable:$true] %s40_s13 }
  0x26   :  { %p964_p3 = scmp.lt.u32.totalorder %s960_s16, %s1170_s2 }
  0x28   :  { %p966_p4 = pnand %p964_p3, %p961_p2 }
  0x2a   :  { %969 = shalt.err (!%p966_p4)
}
  0x2b   :  { %s970_s21 = scalar_lea.vmem %s41_s13, 2048  ;;  %p975_p6 = scmp.lt.s32.totalorder %s41_s13, %s41_s13 }
  0x2c   :  { %p971_p5 = scmp.ne.s32.totalorder %s41_s13, %s970_s21  ;;  %p976_p7 = scmp.lt.s32.totalorder %s970_s21, %s970_s21 }
  0x2e   :  { %p977_p8 = por %p976_p7, %p975_p6 }
  0x30   :  { %p978_p9 = pnand %p977_p8, %p971_p5 }
  0x32   :  { %981 = shalt.err (!%p978_p9)
}
  0x33   :  { %46 = dma.hbm_to_vmem [thread:$0]  %s1170_s2, 2048, %s41_s13, [#allocation7], %s1014_s1, %s1014_s1, %s1015_s9  }
  0x34   :  { %1004 = dma.done.wait [#allocation4], 2048  }
  0x35   :  { %1005 = vsyncadd [#allocation4], 4294965248 }
  0x36   :  { %1006 = dma.done.wait [#allocation7], 6144  }
  0x37   :  { %1007 = vsyncadd [#allocation7], 4294961152  ;;  %v1017_v0 = vmov 0.0   ;;  %v93_v1 = vld [vmem:[#allocation6 + $0x8] sm:$0xff]  ;;  %v95_v2 = vld [vmem:[#allocation6 + $0x18] sm:$0xff]  ;;  %s1018_s2 = smov [#allocation9]  }
  0x38   :  { %188 = vmatprep.mubr.f32.mxu0 %v1017_v0  ;;  %v92_v3 = vld [vmem:[#allocation6] sm:$0xff]  ;;  %v779_v4 = vpack.c.bf16 %v95_v2, %v93_v1  ;;  %v94_v5 = vld [vmem:[#allocation6 + $0x10] sm:$0xff]  ;;  %v97_v6 = vld [vmem:[#allocation6 + $0x28] sm:$0xff]  ;;  %s662_s23 = sshll.u32 %s1018_s2, 4  ;;  %s663_s23 = int_to_ptr.vmem [resolvable:$true] %s662_s23 }
  0x39   :  { %v99_v7 = vld [vmem:[#allocation6 + $0x38] sm:$0xff]  ;;  %v781_v8 = vpack.c.bf16 %v94_v5, %v92_v3  ;;  %v96_v10 = vld [vmem:[#allocation6 + $0x20] sm:$0xff]  ;;  %v98_v11 = vld [vmem:[#allocation6 + $0x30] sm:$0xff]  ;;  %s982_s24 = scalar_lea.vmem %s663_s23, 2048  ;;  %p987_p11 = scmp.lt.s32.totalorder %s663_s23, %s663_s23 }
  0x3a   :  { %v783_v9 = vpack.c.bf16 %v99_v7, %v97_v6  ;;  %v101_v12 = vld [vmem:[#allocation6 + $0x48] sm:$0xff]  ;;  %780 = vmatprep.subr.bf16.mxu0 %v779_v4  ;;  %v103_v13 = vld [vmem:[#allocation6 + $0x58] sm:$0xff]  ;;  %v785_v14 = vpack.c.bf16 %v98_v11, %v96_v10  ;;  %v100_v16 = vld [vmem:[#allocation6 + $0x40] sm:$0xff]  ;;  %p983_p10 = scmp.ne.s32.totalorder %s663_s23, %s982_s24  ;;  %p988_p12 = scmp.lt.s32.totalorder %s982_s24, %s982_s24 }
  0x3b   :  { %782 = vmatpush1.bf16.msra.mxu0 %v781_v8  ;;  %v787_v15 = vpack.c.bf16 %v103_v13, %v101_v12  ;;  %v102_v17 = vld [vmem:[#allocation6 + $0x50] sm:$0xff]  ;;  %v105_v18 = vld [vmem:[#allocation6 + $0x68] sm:$0xff]  ;;  %v107_v19 = vld [vmem:[#allocation6 + $0x78] sm:$0xff] }
  0x3c   :  { %784 = vmatprep.subr.bf16.mxu0 %v783_v9  ;;  %v789_v20 = vpack.c.bf16 %v102_v17, %v100_v16  ;;  %v791_v21 = vpack.c.bf16 %v107_v19, %v105_v18  ;;  %v104_v22 = vld [vmem:[#allocation6 + $0x60] sm:$0xff]  ;;  %v106_v23 = vld [vmem:[#allocation6 + $0x70] sm:$0xff]  ;;  %v109_v24 = vld [vmem:[#allocation6 + $0x88] sm:$0xff]  ;;  %p989_p13 = por %p988_p12, %p987_p11 }
  0x3d   :  { %v111_v25 = vld [vmem:[#allocation6 + $0x98] sm:$0xff]  ;;  %v793_v26 = vpack.c.bf16 %v106_v23, %v104_v22  ;;  %v108_v28 = vld [vmem:[#allocation6 + $0x80] sm:$0xff]  ;;  %v110_v29 = vld [vmem:[#allocation6 + $0x90] sm:$0xff] }
  0x3e   :  { %v795_v27 = vpack.c.bf16 %v111_v25, %v109_v24  ;;  %v113_v30 = vld [vmem:[#allocation6 + $0xa8] sm:$0xff]  ;;  %v115_v31 = vld [vmem:[#allocation6 + $0xb8] sm:$0xff]  ;;  %v797_v32 = vpack.c.bf16 %v110_v29, %v108_v28  ;;  %v112_v34 = vld [vmem:[#allocation6 + $0xa0] sm:$0xff]  ;;  %p990_p0 = pnand %p989_p13, %p983_p10 }
  0x3f   :  { %786 = vmatpush1.bf16.msra.mxu0 %v785_v14  ;;  %v799_v33 = vpack.c.bf16 %v115_v31, %v113_v30  ;;  %v114_v35 = vld [vmem:[#allocation6 + $0xb0] sm:$0xff]  ;;  %v117_v36 = vld [vmem:[#allocation6 + $0xc8] sm:$0xff]  ;;  %v119_v37 = vld [vmem:[#allocation6 + $0xd8] sm:$0xff] }
  0x40   :  { %788 = vmatprep.subr.bf16.mxu0 %v787_v15  ;;  %v801_v38 = vpack.c.bf16 %v114_v35, %v112_v34  ;;  %v803_v39 = vpack.c.bf16 %v119_v37, %v117_v36  ;;  %v116_v40 = vld [vmem:[#allocation6 + $0xc0] sm:$0xff]  ;;  %v118_v41 = vld [vmem:[#allocation6 + $0xd0] sm:$0xff]  ;;  %v121_v42 = vld [vmem:[#allocation6 + $0xe8] sm:$0xff] }
  0x41   :  { %v123_v43 = vld [vmem:[#allocation6 + $0xf8] sm:$0xff]  ;;  %v805_v44 = vpack.c.bf16 %v118_v41, %v116_v40  ;;  %v120_v46 = vld [vmem:[#allocation6 + $0xe0] sm:$0xff]  ;;  %v122_v47 = vld [vmem:[#allocation6 + $0xf0] sm:$0xff] }
  0x42   :  { %v807_v45 = vpack.c.bf16 %v123_v43, %v121_v42  ;;  %v809_v48 = vpack.c.bf16 %v122_v47, %v120_v46  ;;  %v76_v49 = vld [vmem:[#allocation3] sm:$0xff]  ;;  %v77_v50 = vld [vmem:[#allocation3 + $0x8] sm:$0xff]  ;;  %v78_v51 = vld [vmem:[#allocation3 + $0x10] sm:$0xff] }
  0x43   :  { %790 = vmatpush1.bf16.msra.mxu0 %v789_v20  ;;  %v79_v52 = vld [vmem:[#allocation3 + $0x18] sm:$0xff]  ;;  %v80_v53 = vld [vmem:[#allocation3 + $0x20] sm:$0xff]  ;;  %v81_v54 = vld [vmem:[#allocation3 + $0x28] sm:$0xff] }
  0x44   :  { %792 = vmatprep.subr.bf16.mxu0 %v791_v21  ;;  %v82_v55 = vld [vmem:[#allocation3 + $0x30] sm:$0xff]  ;;  %v83_v56 = vld [vmem:[#allocation3 + $0x38] sm:$0xff]  ;;  %v84_v57 = vld [vmem:[#allocation3 + $0x40] sm:$0xff] }
  0x45   :  { %v85_v58 = vld [vmem:[#allocation3 + $0x48] sm:$0xff]  ;;  %v86_v59 = vld [vmem:[#allocation3 + $0x50] sm:$0xff]  ;;  %v87_v60 = vld [vmem:[#allocation3 + $0x58] sm:$0xff] }
  0x46   :  { %v88_v61 = vld [vmem:[#allocation3 + $0x60] sm:$0xff]  ;;  %v89_v62 = vld [vmem:[#allocation3 + $0x68] sm:$0xff]  ;;  %v90_v63 = vld [vmem:[#allocation3 + $0x70] sm:$0xff] }
  0x47   :  { %794 = vmatpush1.bf16.msra.mxu0 %v793_v26  ;;  %v91_v1 = vld [vmem:[#allocation3 + $0x78] sm:$0xff]  ;;  %v429_v2 = vld [vmem:[#allocation8] sm:$0xff]  ;;  %v430_v3 = vld [vmem:[#allocation8 + $0x8] sm:$0xff] }
  0x48   :  { %796 = vmatprep.subr.bf16.mxu0 %v795_v27  ;;  %v811_v4 = vpack.c.bf16 %v430_v3, %v429_v2  ;;  %v431_v5 = vld [vmem:[#allocation8 + $0x10] sm:$0xff]  ;;  %v432_v6 = vld [vmem:[#allocation8 + $0x18] sm:$0xff]  ;;  %v433_v8 = vld [vmem:[#allocation8 + $0x20] sm:$0xff] }
  0x49   :  { %v815_v7 = vpack.c.bf16 %v432_v6, %v431_v5  ;;  %v434_v9 = vld [vmem:[#allocation8 + $0x28] sm:$0xff]  ;;  %v435_v11 = vld [vmem:[#allocation8 + $0x30] sm:$0xff]  ;;  %v436_v12 = vld [vmem:[#allocation8 + $0x38] sm:$0xff] }
  0x4a   :  { %812 = vmatprep.subr.bf16.mxu1 %v811_v4  ;;  %v819_v10 = vpack.c.bf16 %v434_v9, %v433_v8  ;;  %v437_v13 = vld [vmem:[#allocation8 + $0x40] sm:$0xff]  ;;  %v438_v14 = vld [vmem:[#allocation8 + $0x48] sm:$0xff]  ;;  %v439_v16 = vld [vmem:[#allocation8 + $0x50] sm:$0xff] }
  0x4b   :  { %798 = vmatpush1.bf16.msra.mxu0 %v797_v32  ;;  %814 = vmatpush3.bf16.msra.mxu1 %v811_v4  ;;  %v827_v15 = vpack.c.bf16 %v438_v14, %v437_v13  ;;  %v440_v17 = vld [vmem:[#allocation8 + $0x58] sm:$0xff]  ;;  %v441_v19 = vld [vmem:[#allocation8 + $0x60] sm:$0xff]  ;;  %v442_v20 = vld [vmem:[#allocation8 + $0x68] sm:$0xff] }
  0x4c   :  { %800 = vmatprep.subr.bf16.mxu0 %v799_v33  ;;  %816 = vmatprep.subr.bf16.mxu1 %v815_v7  ;;  %v831_v18 = vpack.c.bf16 %v440_v17, %v439_v16  ;;  %v835_v21 = vpack.c.bf16 %v442_v20, %v441_v19  ;;  %v443_v22 = vld [vmem:[#allocation8 + $0x70] sm:$0xff]  ;;  %v444_v23 = vld [vmem:[#allocation8 + $0x78] sm:$0xff] }
  0x4d   :  { %v839_v24 = vpack.c.bf16 %v444_v23, %v443_v22 }
  0x4f   :  { %802 = vmatpush1.bf16.msra.mxu0 %v801_v38  ;;  %818 = vmatpush3.bf16.msra.mxu1 %v815_v7 }
  0x50   :  { %804 = vmatprep.subr.bf16.mxu0 %v803_v39  ;;  %820 = vmatprep.subr.bf16.mxu1 %v819_v10 }
  0x53   :  { %806 = vmatpush1.bf16.msra.mxu0 %v805_v44  ;;  %822 = vmatpush3.bf16.msra.mxu1 %v819_v10 }
  0x54   :  { %808 = vmatprep.subr.bf16.mxu0 %v807_v45 }
  0x57   :  { %810 = vmatpush1.bf16.msra.mxu0 %v809_v48 }
  0x5a   :  { %189 = vmatmul.mubr.f32.vlgmr.msra.gmra.mrb[0].mxu0 %v76_v49 }
  0x5b   :  { %194 = vmatprep.mubr.f32.mxu0 %v1017_v0 }
  0x5e   :  { %195 = vmatmul.mubr.f32.gmra.mrb[2].mxu0 %v77_v50 }
  0x5f   :  { %200 = vmatprep.mubr.f32.mxu0 %v1017_v0 }
  0x62   :  { %201 = vmatmul.mubr.f32.gmra.mrb[4].mxu0 %v78_v51 }
  0x63   :  { %206 = vmatprep.mubr.f32.mxu0 %v1017_v0 }
  0x66   :  { %207 = vmatmul.mubr.f32.gmra.mrb[6].mxu0 %v79_v52 }
  0x67   :  { %212 = vmatprep.mubr.f32.mxu0 %v1017_v0 }
  0x6a   :  { %213 = vmatmul.mubr.f32.gmra.mrb[8].mxu0 %v80_v53 }
  0x6b   :  { %218 = vmatprep.mubr.f32.mxu0 %v1017_v0 }
  0x6e   :  { %219 = vmatmul.mubr.f32.gmra.mrb[10].mxu0 %v81_v54 }
  0x6f   :  { %224 = vmatprep.mubr.f32.mxu0 %v1017_v0 }
  0x72   :  { %225 = vmatmul.mubr.f32.gmra.mrb[12].mxu0 %v82_v55 }
  0x73   :  { %230 = vmatprep.mubr.f32.mxu0 %v1017_v0 }
  0x76   :  { %231 = vmatmul.mubr.f32.gmra.mrb[14].mxu0 %v83_v56 }
  0x77   :  { %236 = vmatprep.mubr.f32.mxu0 %v1017_v0 }
  0x7a   :  { %237 = vmatmul.mubr.f32.gmra.mrb[16].mxu0 %v84_v57 }
  0x7b   :  { %242 = vmatprep.mubr.f32.mxu0 %v1017_v0 }
  0x7e   :  { %243 = vmatmul.mubr.f32.gmra.mrb[18].mxu0 %v85_v58 }
  0x7f   :  { %248 = vmatprep.mubr.f32.mxu0 %v1017_v0 }
  0x82   :  { %249 = vmatmul.mubr.f32.gmra.mrb[20].mxu0 %v86_v59 }
  0x83   :  { %254 = vmatprep.mubr.f32.mxu0 %v1017_v0 }
  0x86   :  { %255 = vmatmul.mubr.f32.gmra.mrb[22].mxu0 %v87_v60 }
  0x87   :  { %260 = vmatprep.mubr.f32.mxu0 %v1017_v0 }
  0x8a   :  { %261 = vmatmul.mubr.f32.gmra.mrb[24].mxu0 %v88_v61 }
  0x8b   :  { %266 = vmatprep.mubr.f32.mxu0 %v1017_v0 }
  0x8e   :  { %267 = vmatmul.mubr.f32.gmra.mrb[26].mxu0 %v89_v62 }
  0x8f   :  { %272 = vmatprep.mubr.f32.mxu0 %v1017_v0 }
  0x92   :  { %273 = vmatmul.mubr.f32.gmra.mrb[28].mxu0 %v90_v63 }
  0x93   :  { %278 = vmatprep.mubr.f32.mxu0 %v1017_v0  ;;  %v823_v0 = vpack.c.bf16 %v436_v12, %v435_v11 }
  0x95   :  { %824 = vmatprep.subr.bf16.mxu1 %v823_v0 }
  0x96   :  { %279 = vmatmul.mubr.f32.gmra.mrb[30].mxu0 %v91_v1  ;;  %826 = vmatpush3.bf16.msra.mxu1 %v823_v0 }
  0x97   :  { %828 = vmatprep.subr.bf16.mxu1 %v827_v15 }
  0x9a   :  { %830 = vmatpush3.bf16.msra.mxu1 %v827_v15 }
  0x9b   :  { %832 = vmatprep.subr.bf16.mxu1 %v831_v18 }
  0x9e   :  { %834 = vmatpush3.bf16.msra.mxu1 %v831_v18 }
  0x9f   :  { %836 = vmatprep.subr.bf16.mxu1 %v835_v21 }
  0xa2   :  { %838 = vmatpush3.bf16.msra.mxu1 %v835_v21 }
  0xa3   :  { %840 = vmatprep.subr.bf16.mxu1 %v839_v24 }
  0xa6   :  { %842 = vmatpush3.bf16.msra.mxu1 %v839_v24 }
 0x12d   :  { %v190_v25 = vpop.f32.mrb[0].mxu0 }
 0x12e   :  { %v675_v26 = vmul.f32 -1.442695, %v190_v25  ;;  %v192_v27 = vpop.f32.mrb[1].mxu0 }
 0x130   :  { %852 = vpow2.f32 %v675_v26 }
 0x131   :  { %v196_v28 = vpop.f32.mrb[2].mxu0 }
 0x132   :  { %v676_v29 = vmul.f32 -1.442695, %v196_v28  ;;  %v198_v30 = vpop.f32.mrb[3].mxu0 }
 0x134   :  { %854 = vpow2.f32 %v676_v29 }
 0x135   :  { %v202_v31 = vpop.f32.mrb[4].mxu0 }
 0x136   :  { %v677_v32 = vmul.f32 -1.442695, %v202_v31  ;;  %v204_v33 = vpop.f32.mrb[5].mxu0 }
 0x138   :  { %856 = vpow2.f32 %v677_v32 }
 0x139   :  { %v208_v34 = vpop.f32.mrb[6].mxu0 }
 0x13a   :  { %v853_v35 = vpop.eup %852  ;;  %v678_v36 = vmul.f32 -1.442695, %v208_v34  ;;  %v210_v37 = vpop.f32.mrb[7].mxu0 }
 0x13b   :  { %v333_v38 = vadd.f32 1.0, %v853_v35 }
 0x13c   :  { %858 = vpow2.f32 %v678_v36 }
 0x13d   :  { %860 = vrcp.f32 %v333_v38  ;;  %v1097_v39 = vpop.f32.mrb[8].mxu0 }
 0x13e   :  { %v855_v40 = vpop.eup %854  ;;  %v679_v41 = vmul.f32 -1.442695, %v1097_v39  ;;  %v1100_v42 = vpop.f32.mrb[9].mxu0 }
 0x13f   :  { %v334_v43 = vadd.f32 1.0, %v855_v40 }
 0x140   :  { %862 = vpow2.f32 %v679_v41 }
 0x141   :  { %864 = vrcp.f32 %v334_v43  ;;  %v1102_v44 = vpop.f32.mrb[10].mxu0 }
 0x142   :  { %v857_v45 = vpop.eup %856  ;;  %v680_v46 = vmul.f32 -1.442695, %v1102_v44  ;;  %v1105_v47 = vpop.f32.mrb[11].mxu0 }
 0x143   :  { %v335_v48 = vadd.f32 1.0, %v857_v45 }
 0x144   :  { %866 = vpow2.f32 %v680_v46 }
 0x145   :  { %868 = vrcp.f32 %v335_v48  ;;  %v1107_v49 = vpop.f32.mrb[12].mxu0 }
 0x146   :  { %v859_v50 = vpop.eup %858  ;;  %v681_v51 = vmul.f32 -1.442695, %v1107_v49  ;;  %v1110_v52 = vpop.f32.mrb[13].mxu0 }
 0x147   :  { %v861_v53 = vpop.eup %860  ;;  %v336_v54 = vadd.f32 1.0, %v859_v50 }
 0x148   :  { %v381_v55 = vmul.f32 %v861_v53, %v190_v25  ;;  %870 = vpow2.f32 %v681_v51 }
 0x149   :  { %872 = vrcp.f32 %v336_v54  ;;  %v1112_v56 = vpop.f32.mrb[14].mxu0 }
 0x14a   :  { %v863_v57 = vpop.eup %862  ;;  %v682_v58 = vmul.f32 -1.442695, %v1112_v56  ;;  %v1115_v59 = vpop.f32.mrb[15].mxu0  ;;  %v397_v60 = vmul.f32 %v381_v55, %v192_v27 }
 0x14b   :  { %v865_v61 = vpop.eup %864  ;;  %v337_v62 = vadd.f32 1.0, %v863_v57 }
 0x14c   :  { %v382_v63 = vmul.f32 %v865_v61, %v196_v28  ;;  %874 = vpow2.f32 %v682_v58  ;;  %755 = vmatprep.mubr.f32.mxu1 %v397_v60 }
 0x14d   :  { %876 = vrcp.f32 %v337_v62  ;;  %v1117_v1 = vpop.f32.mrb[16].mxu0 }
 0x14e   :  { %v867_v2 = vpop.eup %866  ;;  %v398_v3 = vmul.f32 %v382_v63, %v198_v30  ;;  %v683_v4 = vmul.f32 -1.442695, %v1117_v1  ;;  %v1120_v5 = vpop.f32.mrb[17].mxu0 }
 0x14f   :  { %v869_v6 = vpop.eup %868  ;;  %v338_v7 = vadd.f32 1.0, %v867_v2 }
 0x150   :  { %v383_v8 = vmul.f32 %v869_v6, %v202_v31  ;;  %878 = vpow2.f32 %v683_v4  ;;  %756 = vmatmul.mubr.f32.vlgmr.msra.gmra.mrb[0].mxu1 %v398_v3 }
 0x151   :  { %880 = vrcp.f32 %v338_v7  ;;  %v1122_v9 = vpop.f32.mrb[18].mxu0 }
 0x152   :  { %v871_v10 = vpop.eup %870  ;;  %v399_v11 = vmul.f32 %v383_v8, %v204_v33  ;;  %v684_v12 = vmul.f32 -1.442695, %v1122_v9  ;;  %v1125_v0 = vpop.f32.mrb[19].mxu0 }
 0x153   :  { %v873_v13 = vpop.eup %872  ;;  %v339_v14 = vadd.f32 1.0, %v871_v10 }
 0x154   :  { %v384_v15 = vmul.f32 %v873_v13, %v208_v34  ;;  %882 = vpow2.f32 %v684_v12  ;;  %758 = vmatprep.mubr.f32.mxu1 %v399_v11 }
 0x155   :  { %884 = vrcp.f32 %v339_v14  ;;  %v1127_v16 = vpop.f32.mrb[20].mxu0 }
 0x156   :  { %v875_v17 = vpop.eup %874  ;;  %v400_v18 = vmul.f32 %v384_v15, %v210_v37  ;;  %v685_v19 = vmul.f32 -1.442695, %v1127_v16  ;;  %v1130_v20 = vpop.f32.mrb[21].mxu0 }
 0x157   :  { %v877_v21 = vpop.eup %876  ;;  %v340_v22 = vadd.f32 1.0, %v875_v17 }
 0x158   :  { %v385_v23 = vmul.f32 %v877_v21, %v1097_v39  ;;  %886 = vpow2.f32 %v685_v19  ;;  %759 = vmatmul.mubr.f32.gmra.mrb[2].mxu1 %v400_v18 }
 0x159   :  { %888 = vrcp.f32 %v340_v22  ;;  %v1133_v24 = vpop.f32.mrb[22].mxu0 }
 0x15a   :  { %v879_v25 = vpop.eup %878  ;;  %v401_v26 = vmul.f32 %v385_v23, %v1100_v42  ;;  %v686_v27 = vmul.f32 -1.442695, %v1133_v24  ;;  %v1137_v28 = vpop.f32.mrb[23].mxu0 }
 0x15b   :  { %v881_v29 = vpop.eup %880  ;;  %v341_v30 = vadd.f32 1.0, %v879_v25 }
 0x15c   :  { %v386_v31 = vmul.f32 %v881_v29, %v1102_v44  ;;  %890 = vpow2.f32 %v686_v27  ;;  %761 = vmatprep.mubr.f32.mxu1 %v401_v26 }
 0x15d   :  { %892 = vrcp.f32 %v341_v30  ;;  %v262_v32 = vpop.f32.mrb[24].mxu0 }
 0x15e   :  { %v883_v33 = vpop.eup %882  ;;  %v402_v34 = vmul.f32 %v386_v31, %v1105_v47  ;;  %v687_v35 = vmul.f32 -1.442695, %v262_v32  ;;  %v264_v36 = vpop.f32.mrb[25].mxu0 }
 0x15f   :  { %v885_v37 = vpop.eup %884  ;;  %v342_v38 = vadd.f32 1.0, %v883_v33 }
 0x160   :  { %v387_v39 = vmul.f32 %v885_v37, %v1107_v49  ;;  %894 = vpow2.f32 %v687_v35  ;;  %762 = vmatmul.mubr.f32.gmra.mrb[4].mxu1 %v402_v34 }
 0x161   :  { %896 = vrcp.f32 %v342_v38  ;;  %v268_v40 = vpop.f32.mrb[26].mxu0 }
 0x162   :  { %v887_v41 = vpop.eup %886  ;;  %v403_v42 = vmul.f32 %v387_v39, %v1110_v52  ;;  %v688_v43 = vmul.f32 -1.442695, %v268_v40  ;;  %v270_v44 = vpop.f32.mrb[27].mxu0 }
 0x163   :  { %v889_v45 = vpop.eup %888  ;;  %v343_v46 = vadd.f32 1.0, %v887_v41 }
 0x164   :  { %v388_v48 = vmul.f32 %v889_v45, %v1112_v56  ;;  %898 = vpow2.f32 %v688_v43  ;;  %764 = vmatprep.mubr.f32.mxu1 %v403_v42 }
 0x165   :  { %900 = vrcp.f32 %v343_v46  ;;  %v274_v47 = vpop.f32.mrb[28].mxu0 }
 0x166   :  { %v891_v50 = vpop.eup %890  ;;  %v404_v49 = vmul.f32 %v388_v48, %v1115_v59  ;;  %v689_v51 = vmul.f32 -1.442695, %v274_v47  ;;  %v276_v53 = vpop.f32.mrb[29].mxu0 }
 0x167   :  { %v893_v54 = vpop.eup %892  ;;  %v344_v55 = vadd.f32 1.0, %v891_v50 }
 0x168   :  { %v389_v57 = vmul.f32 %v893_v54, %v1117_v1  ;;  %902 = vpow2.f32 %v689_v51  ;;  %765 = vmatmul.mubr.f32.gmra.mrb[6].mxu1 %v404_v49 }
 0x169   :  { %904 = vrcp.f32 %v344_v55  ;;  %v280_v52 = vpop.f32.mrb[30].mxu0 }
 0x16a   :  { %v895_v58 = vpop.eup %894  ;;  %v405_v56 = vmul.f32 %v389_v57, %v1120_v5  ;;  %v690_v60 = vmul.f32 -1.442695, %v280_v52  ;;  %v282_v61 = vpop.f32.mrb[31].mxu0 }
 0x16b   :  { %v897_v62 = vpop.eup %896  ;;  %v345_v63 = vadd.f32 1.0, %v895_v58 }
 0x16c   :  { %v390_v2 = vmul.f32 %v897_v62, %v1122_v9  ;;  %906 = vpow2.f32 %v690_v60  ;;  %767 = vmatprep.mubr.f32.mxu1 %v405_v56 }
 0x16d   :  { %908 = vrcp.f32 %v345_v63 }
 0x16e   :  { %v899_v59 = vpop.eup %898  ;;  %v406_v3 = vmul.f32 %v390_v2, %v1125_v0 }
 0x16f   :  { %v901_v1 = vpop.eup %900  ;;  %v346_v4 = vadd.f32 1.0, %v899_v59 }
 0x170   :  { %v391_v6 = vmul.f32 %v901_v1, %v1127_v16  ;;  %768 = vmatmul.mubr.f32.gmra.mrb[8].mxu1 %v406_v3 }
 0x171   :  { %910 = vrcp.f32 %v346_v4 }
 0x172   :  { %v903_v7 = vpop.eup %902  ;;  %v407_v5 = vmul.f32 %v391_v6, %v1130_v20 }
 0x173   :  { %v905_v8 = vpop.eup %904  ;;  %v347_v10 = vadd.f32 1.0, %v903_v7 }
 0x174   :  { %v392_v11 = vmul.f32 %v905_v8, %v1133_v24  ;;  %770 = vmatprep.mubr.f32.mxu1 %v407_v5 }
 0x175   :  { %912 = vrcp.f32 %v347_v10 }
 0x176   :  { %v907_v9 = vpop.eup %906  ;;  %v408_v12 = vmul.f32 %v392_v11, %v1137_v28 }
 0x177   :  { %v909_v13 = vpop.eup %908  ;;  %v348_v0 = vadd.f32 1.0, %v907_v9 }
 0x178   :  { %v393_v14 = vmul.f32 %v909_v13, %v262_v32  ;;  %771 = vmatmul.mubr.f32.gmra.mrb[10].mxu1 %v408_v12 }
 0x179   :  { %914 = vrcp.f32 %v348_v0 }
 0x17a   :  { %v409_v15 = vmul.f32 %v393_v14, %v264_v36 }
 0x17b   :  { %v911_v16 = vpop.eup %910 }
 0x17c   :  { %v394_v17 = vmul.f32 %v911_v16, %v268_v40  ;;  %773 = vmatprep.mubr.f32.mxu1 %v409_v15 }
 0x17e   :  { %v410_v18 = vmul.f32 %v394_v17, %v270_v44 }
 0x17f   :  { %v913_v19 = vpop.eup %912 }
 0x180   :  { %v395_v20 = vmul.f32 %v913_v19, %v274_v47  ;;  %774 = vmatmul.mubr.f32.gmra.mrb[12].mxu1 %v410_v18 }
 0x182   :  { %v411_v21 = vmul.f32 %v395_v20, %v276_v53 }
 0x183   :  { %v915_v22 = vpop.eup %914 }
 0x184   :  { %v396_v23 = vmul.f32 %v915_v22, %v280_v52  ;;  %776 = vmatprep.mubr.f32.mxu1 %v411_v21 }
 0x186   :  { %v412_v24 = vmul.f32 %v396_v23, %v282_v61 }
 0x188   :  { %777 = vmatmul.mubr.f32.gmra.mrb[14].mxu1 %v412_v24 }
 0x223   :  { %v757_v25 = vpop.f32.mrb[0].mxu1 }
 0x224   :  { %642 = vst [vmem:[#allocation9 + $0x8] sm:$0xff] %v757_v25  ;;  %v511_v26 = vpop.f32.mrb[1].mxu1 }
 0x225   :  { %641 = vst [vmem:[#allocation9] sm:$0xff] %v511_v26 }
 0x22b   :  { %v760_v27 = vpop.f32.mrb[2].mxu1 }
 0x22c   :  { %644 = vst [vmem:[#allocation9 + $0x18] sm:$0xff] %v760_v27  ;;  %v521_v28 = vpop.f32.mrb[3].mxu1 }
 0x22d   :  { %643 = vst [vmem:[#allocation9 + $0x10] sm:$0xff] %v521_v28 }
 0x233   :  { %v763_v29 = vpop.f32.mrb[4].mxu1 }
 0x234   :  { %646 = vst [vmem:[#allocation9 + $0x28] sm:$0xff] %v763_v29  ;;  %v531_v30 = vpop.f32.mrb[5].mxu1 }
 0x235   :  { %645 = vst [vmem:[#allocation9 + $0x20] sm:$0xff] %v531_v30 }
 0x23b   :  { %v766_v31 = vpop.f32.mrb[6].mxu1 }
 0x23c   :  { %648 = vst [vmem:[#allocation9 + $0x38] sm:$0xff] %v766_v31  ;;  %v541_v32 = vpop.f32.mrb[7].mxu1 }
 0x23d   :  { %647 = vst [vmem:[#allocation9 + $0x30] sm:$0xff] %v541_v32 }
 0x243   :  { %v769_v33 = vpop.f32.mrb[8].mxu1 }
 0x244   :  { %650 = vst [vmem:[#allocation9 + $0x48] sm:$0xff] %v769_v33  ;;  %v551_v34 = vpop.f32.mrb[9].mxu1 }
 0x245   :  { %649 = vst [vmem:[#allocation9 + $0x40] sm:$0xff] %v551_v34 }
 0x24b   :  { %v772_v35 = vpop.f32.mrb[10].mxu1 }
 0x24c   :  { %652 = vst [vmem:[#allocation9 + $0x58] sm:$0xff] %v772_v35  ;;  %v561_v36 = vpop.f32.mrb[11].mxu1 }
 0x24d   :  { %651 = vst [vmem:[#allocation9 + $0x50] sm:$0xff] %v561_v36 }
 0x253   :  { %v775_v37 = vpop.f32.mrb[12].mxu1 }
 0x254   :  { %654 = vst [vmem:[#allocation9 + $0x68] sm:$0xff] %v775_v37  ;;  %v571_v38 = vpop.f32.mrb[13].mxu1 }
 0x255   :  { %653 = vst [vmem:[#allocation9 + $0x60] sm:$0xff] %v571_v38 }
 0x25b   :  { %v778_v39 = vpop.f32.mrb[14].mxu1 }
 0x25c   :  { %656 = vst [vmem:[#allocation9 + $0x78] sm:$0xff] %v778_v39  ;;  %v581_v40 = vpop.f32.mrb[15].mxu1 }
 0x25d   :  { %655 = vst [vmem:[#allocation9 + $0x70] sm:$0xff] %v581_v40 }
 0x25e   :  { %993 = shalt.err (!%p990_p0)
}
 0x25f   :  { %s994_s27 = scalar_lea.hbm %s1171_s3, 2048 }
 0x260   :  { %p995_p1 = scmp.ne.s32.totalorder %s1171_s3, %s994_s27  ;;  %p998_p2 = scmp.lt.u32.totalorder %s994_s27, %s1171_s3 }
 0x262   :  { %p1000_p3 = pnand %p998_p2, %p995_p1 }
 0x264   :  { %1003 = shalt.err (!%p1000_p3)
}
 0x265   :  { %668 = dma.vmem_to_hbm [thread:$0]  %s663_s23, 2048, %s1171_s3, [#allocation5], %s1014_s1, %s1014_s1, %s1015_s9  }
 0x266   :  { %1008 = dma.done.wait [#allocation5], 2048  }
 0x267   :  { %1009 = vsyncadd [#allocation5], 4294965248 }
 0x268   :  { %672 = vsyncpa [#allocation4], 1 }
 0x269   :  { %673 = vsyncpa [#allocation7], 1 }
 0x26a   :  { %674 = vsyncpa [#allocation5], 1 }

</bundles_post_ra>
